<compile_context>
chip_gen: v6e
topology: v6e:2x2x1
jax: 0.10.0
libtpu: 0.0.40
codegen_flags: <defaults>
</compile_context>

<pallas_src>
import functools

import jax
import jax.numpy as jnp
from jax.experimental import pallas as pl
from jax.experimental.pallas import tpu as pltpu

H1 = 512          # feature width
H2 = 256          # per-head hidden width
OUT_PAD = 256     # lane-padded width of the fused output head
ADV_COL = 128     # lane-aligned column where the advantage block starts


def dueling_dqn_kernel(x_ref, w1_ref, wh_ref, wo_ref, b_ref, q_ref, *, n_actions):
    # Bias slab layout: [b1 (512) | bv1|ba1 (512) | padded head bias (256)]
    b1 = b_ref[:, :H1]
    bh = b_ref[:, H1:H1 + 2 * H2]
    bo = b_ref[:, H1 + 2 * H2:]

    # feature_layer: Linear(n_obs, 512) + ReLU.  bf16 MXU inputs, f32 accumulate.
    xb = x_ref[...].astype(jnp.bfloat16)
    feat = jnp.dot(xb, w1_ref[...], preferred_element_type=jnp.float32) + b1
    feat = jnp.maximum(feat, 0.0)

    # Fused value/advantage hidden layer: one lane-full (512, 512) matmul.
    # Columns [:256] = value hidden, [256:] = advantage hidden.
    h = jnp.dot(feat.astype(jnp.bfloat16), wh_ref[...],
                preferred_element_type=jnp.float32) + bh
    h = jnp.maximum(h, 0.0)

    # Fused output heads: block-diagonal (512, 256) weight, one matmul.
    # out[:, 0] = value, out[:, 128:128+A] = advantage (lane-aligned slices).
    out = jnp.dot(h.astype(jnp.bfloat16), wo_ref[...],
                  preferred_element_type=jnp.float32) + bo
    value = out[:, 0:1]
    adv = out[:, ADV_COL:ADV_COL + n_actions]

    # q = value + advantage - advantage.mean(dim=1, keepdim=True)
    q_ref[...] = (value + adv - jnp.mean(adv, axis=1, keepdims=True)).astype(q_ref.dtype)


def dueling_dqn_forward(x, packed, n_actions, *, block_b=512):
    """x: (B, n_obs) f32.  packed: dict from pack_params()."""
    B, n_obs = x.shape
    bm = B if B <= block_b else block_b          # batch block (<=512 rows keeps v7x VMEM happy)
    grid = (pl.cdiv(B, bm),)
    kernel = functools.partial(dueling_dqn_kernel, n_actions=n_actions)

    def full_spec(arr):
        # Whole array resident; constant block index => DMA'd once, not per grid step.
        return pl.BlockSpec(arr.shape, lambda i: (0, 0))

    return pl.pallas_call(
        kernel,
        out_shape=jax.ShapeDtypeStruct((B, n_actions), jnp.float32),
        grid=grid,
        in_specs=[
            pl.BlockSpec((bm, n_obs), lambda i: (i, 0)),
            full_spec(packed["w1"]),
            full_spec(packed["w_heads"]),
            full_spec(packed["w_out"]),
            full_spec(packed["biases"]),
        ],
        out_specs=pl.BlockSpec((bm, n_actions), lambda i: (i, 0)),
        compiler_params=pltpu.CompilerParams(dimension_semantics=("parallel",)),
    )(x, packed["w1"], packed["w_heads"], packed["w_out"], packed["biases"])


def init_params(key, n_observations, n_actions):
    """PyTorch-style (uniform +-1/sqrt(fan_in)) init; weights stored [in, out]."""
    def linear(key, fan_in, fan_out):
        kw, kb = jax.random.split(key)
        bound = 1.0 / jnp.sqrt(fan_in)
        w = jax.random.uniform(kw, (fan_in, fan_out), jnp.float32, -bound, bound)
        b = jax.random.uniform(kb, (1, fan_out), jnp.float32, -bound, bound)
        return w, b

    k1, k2, k3, k4, k5 = jax.random.split(key, 5)
    w1, b1 = linear(k1, n_observations, H1)
    wv1, bv1 = linear(k2, H1, H2)
    wv2, bv2 = linear(k3, H2, 1)
    wa1, ba1 = linear(k4, H1, H2)
    wa2, ba2 = linear(k5, H2, n_actions)
    return dict(w1=w1, b1=b1, wv1=wv1, bv1=bv1, wv2=wv2, bv2=bv2,
                wa1=wa1, ba1=ba1, wa2=wa2, ba2=ba2)


def pack_params(p, n_actions):
    """Repack f32 PyTorch-style params into the fused bf16 layout the kernel expects."""
    w1 = p["w1"].astype(jnp.bfloat16)

    # Fused hidden weight: [wv1 | wa1] -> (512, 512)
    w_heads = jnp.concatenate([p["wv1"], p["wa1"]], axis=1).astype(jnp.bfloat16)

    # Fused, lane-padded output head: block-diagonal (512, 256).
    w_out = jnp.zeros((H1, OUT_PAD), jnp.float32)
    w_out = w_out.at[:H2, 0:1].set(p["wv2"])
    w_out = w_out.at[H2:, ADV_COL:ADV_COL + n_actions].set(p["wa2"])
    w_out = w_out.astype(jnp.bfloat16)

    # Single f32 bias slab: [b1 | bv1 | ba1 | padded head bias] -> (1, 1280)
    b_out = jnp.zeros((1, OUT_PAD), jnp.float32)
    b_out = b_out.at[:, 0:1].set(p["bv2"])
    b_out = b_out.at[:, ADV_COL:ADV_COL + n_actions].set(p["ba2"])
    biases = jnp.concatenate([p["b1"], p["bv1"], p["ba1"], b_out], axis=1)

    return dict(w1=w1, w_heads=w_heads, w_out=w_out, biases=biases)


def reference_forward_f32(x, p):
    feat = jax.nn.relu(x @ p["w1"] + p["b1"])
    value = jax.nn.relu(feat @ p["wv1"] + p["bv1"]) @ p["wv2"] + p["bv2"]
    adv = jax.nn.relu(feat @ p["wa1"] + p["ba1"]) @ p["wa2"] + p["ba2"]
    return value + adv - jnp.mean(adv, axis=1, keepdims=True)


def reference_forward_bf16(x, p):
    """Emulates the kernel's precision: bf16 matmul inputs, f32 accumulation."""
    def bdot(a, w):
        return jnp.dot(a.astype(jnp.bfloat16), w.astype(jnp.bfloat16),
                       preferred_element_type=jnp.float32)
    feat = jax.nn.relu(bdot(x, p["w1"]) + p["b1"])
    value = bdot(jax.nn.relu(bdot(feat, p["wv1"]) + p["bv1"]), p["wv2"]) + p["bv2"]
    adv = bdot(jax.nn.relu(bdot(feat, p["wa1"]) + p["ba1"]), p["wa2"]) + p["ba2"]
    return value + adv - jnp.mean(adv, axis=1, keepdims=True)


if __name__ == "__main__":
    # CartPole-like sizes: 4 observations, 2 actions; small batch.
    batch, n_observations, n_actions = 8, 4, 2

    key = jax.random.PRNGKey(0)
    kx, kp = jax.random.split(key)
    x = jax.random.normal(kx, (batch, n_observations), jnp.float32)

    raw_params = init_params(kp, n_observations, n_actions)
    packed = pack_params(raw_params, n_actions)

    q = dueling_dqn_forward(x, packed, n_actions)
    q = jax.block_until_ready(q)

    q_ref_bf16 = reference_forward_bf16(x, raw_params)   # same precision recipe
    q_ref_f32 = reference_forward_f32(x, raw_params)     # original f32 semantics

    assert q.shape == (batch, n_actions)
    assert jnp.allclose(q, q_ref_bf16, atol=5e-3, rtol=5e-3)
    assert jnp.allclose(q, q_ref_f32, atol=5e-2, rtol=5e-2)

    print("KERNEL_OK")
</pallas_src>

<mosaic_0001>
module attributes {stable_mosaic.version = 11 : i64} {
  func.func @dueling_dqn_kernel(%arg0: i32, %arg1: memref<8x4xf32, #tpu.memory_space<vmem>>, %arg2: memref<4x512xbf16, #tpu.memory_space<vmem>>, %arg3: memref<512x512xbf16, #tpu.memory_space<vmem>>, %arg4: memref<512x256xbf16, #tpu.memory_space<vmem>>, %arg5: memref<1x1280xf32, #tpu.memory_space<vmem>>, %arg6: memref<8x2xf32, #tpu.memory_space<vmem>>) attributes {dimension_semantics = [#tpu.dimension_semantics<parallel>], iteration_bounds = array<i64: 1>, scalar_prefetch = 0 : i64, scratch_operands = 0 : i64, tpu.core_type = #tpu.core_type<tc>, window_params = [{transform_indices = @transform_0, window_bounds = array<i64: 8, 4>}, {pipeline_mode = #tpu.pipeline_mode<synchronous>, transform_indices = @transform_1, window_bounds = array<i64: 4, 512>}, {pipeline_mode = #tpu.pipeline_mode<synchronous>, transform_indices = @transform_2, window_bounds = array<i64: 512, 512>}, {pipeline_mode = #tpu.pipeline_mode<synchronous>, transform_indices = @transform_3, window_bounds = array<i64: 512, 256>}, {pipeline_mode = #tpu.pipeline_mode<synchronous>, transform_indices = @transform_4, window_bounds = array<i64: 1, 1280>}, {transform_indices = @transform_5, window_bounds = array<i64: 8, 2>}]} {
    %c0 = arith.constant 0 : index
    %c0_0 = arith.constant 0 : index
    %0 = vector.load %arg5[%c0, %c0_0] : memref<1x1280xf32, #tpu.memory_space<vmem>>, vector<1x512xf32>
    %c0_1 = arith.constant 0 : index
    %c512 = arith.constant 512 : index
    %1 = vector.load %arg5[%c0_1, %c512] : memref<1x1280xf32, #tpu.memory_space<vmem>>, vector<1x512xf32>
    %c0_2 = arith.constant 0 : index
    %c1024 = arith.constant 1024 : index
    %2 = vector.load %arg5[%c0_2, %c1024] : memref<1x1280xf32, #tpu.memory_space<vmem>>, vector<1x256xf32>
    %c0_3 = arith.constant 0 : index
    %c0_4 = arith.constant 0 : index
    %3 = vector.load %arg1[%c0_3, %c0_4] : memref<8x4xf32, #tpu.memory_space<vmem>>, vector<8x4xf32>
    %4 = arith.truncf %3 : vector<8x4xf32> to vector<8x4xbf16>
    %c0_5 = arith.constant 0 : index
    %c0_6 = arith.constant 0 : index
    %5 = vector.load %arg2[%c0_5, %c0_6] : memref<4x512xbf16, #tpu.memory_space<vmem>>, vector<4x512xbf16>
    %cst = arith.constant dense<0.000000e+00> : vector<8x512xf32>
    %6 = tpu.matmul %4, %5, %cst {dimension_numbers = #tpu.dot_dimension_numbers<[1], [0], [0], [1], [0, 0, 1, 1], [], []>} : vector<8x4xbf16>, vector<4x512xbf16>, vector<8x512xf32> -> vector<8x512xf32>
    %7 = vector.broadcast %0 : vector<1x512xf32> to vector<8x512xf32>
    %8 = arith.addf %6, %7 : vector<8x512xf32>
    %cst_7 = arith.constant 0.000000e+00 : f32
    %9 = vector.broadcast %cst_7 : f32 to vector<8x512xf32>
    %10 = arith.maximumf %8, %9 : vector<8x512xf32>
    %11 = arith.truncf %10 : vector<8x512xf32> to vector<8x512xbf16>
    %c0_8 = arith.constant 0 : index
    %c0_9 = arith.constant 0 : index
    %12 = vector.load %arg3[%c0_8, %c0_9] : memref<512x512xbf16, #tpu.memory_space<vmem>>, vector<512x512xbf16>
    %cst_10 = arith.constant dense<0.000000e+00> : vector<8x512xf32>
    %13 = tpu.matmul %11, %12, %cst_10 {dimension_numbers = #tpu.dot_dimension_numbers<[1], [0], [0], [1], [0, 0, 1, 1], [], []>} : vector<8x512xbf16>, vector<512x512xbf16>, vector<8x512xf32> -> vector<8x512xf32>
    %14 = vector.broadcast %1 : vector<1x512xf32> to vector<8x512xf32>
    %15 = arith.addf %13, %14 : vector<8x512xf32>
    %cst_11 = arith.constant 0.000000e+00 : f32
    %16 = vector.broadcast %cst_11 : f32 to vector<8x512xf32>
    %17 = arith.maximumf %15, %16 : vector<8x512xf32>
    %18 = arith.truncf %17 : vector<8x512xf32> to vector<8x512xbf16>
    %c0_12 = arith.constant 0 : index
    %c0_13 = arith.constant 0 : index
    %19 = vector.load %arg4[%c0_12, %c0_13] : memref<512x256xbf16, #tpu.memory_space<vmem>>, vector<512x256xbf16>
    %cst_14 = arith.constant dense<0.000000e+00> : vector<8x256xf32>
    %20 = tpu.matmul %18, %19, %cst_14 {dimension_numbers = #tpu.dot_dimension_numbers<[1], [0], [0], [1], [0, 0, 1, 1], [], []>} : vector<8x512xbf16>, vector<512x256xbf16>, vector<8x256xf32> -> vector<8x256xf32>
    %21 = vector.broadcast %2 : vector<1x256xf32> to vector<8x256xf32>
    %22 = arith.addf %20, %21 : vector<8x256xf32>
    %23 = vector.extract_strided_slice %22 {offsets = [0, 0], sizes = [8, 1], strides = [1, 1]} : vector<8x256xf32> to vector<8x1xf32>
    %24 = vector.extract_strided_slice %22 {offsets = [0, 128], sizes = [8, 2], strides = [1, 1]} : vector<8x256xf32> to vector<8x2xf32>
    %25 = vector.broadcast %23 : vector<8x1xf32> to vector<8x2xf32>
    %26 = arith.addf %25, %24 : vector<8x2xf32>
    %cst_15 = arith.constant dense<0.000000e+00> : vector<8xf32>
    %27 = vector.multi_reduction <add>, %24, %cst_15 [1] : vector<8x2xf32> to vector<8xf32>
    %28 = vector.shape_cast %27 : vector<8xf32> to vector<8x1xf32>
    %cst_16 = arith.constant 2.000000e+00 : f32
    %29 = vector.broadcast %cst_16 : f32 to vector<8x1xf32>
    %30 = arith.divf %28, %29 : vector<8x1xf32>
    %31 = vector.broadcast %30 : vector<8x1xf32> to vector<8x2xf32>
    %32 = arith.subf %26, %31 : vector<8x2xf32>
    %c0_17 = arith.constant 0 : index
    %c0_18 = arith.constant 0 : index
    %33 = vector.load %arg6[%c0_17, %c0_18] : memref<8x2xf32, #tpu.memory_space<vmem>>, vector<8x2xf32>
    tpu.vector_store %arg6[%c0_17, %c0_18], %32 {strides = array<i32>} : memref<8x2xf32, #tpu.memory_space<vmem>>, vector<8x2xf32>,
    return
  }
  func.func @transform_0(%arg0: i32) -> (i32, i32) {
    %c0_i32 = arith.constant 0 : i32
    %c0_i32_0 = arith.constant 0 : i32
    return %arg0, %c0_i32 : i32, i32
  }
  func.func @transform_1(%arg0: i32) -> (i32, i32) {
    %c0_i32 = arith.constant 0 : i32
    %c0_i32_0 = arith.constant 0 : i32
    %c0_i32_1 = arith.constant 0 : i32
    return %c0_i32, %c0_i32_0 : i32, i32
  }
  func.func @transform_2(%arg0: i32) -> (i32, i32) {
    %c0_i32 = arith.constant 0 : i32
    %c0_i32_0 = arith.constant 0 : i32
    %c0_i32_1 = arith.constant 0 : i32
    return %c0_i32, %c0_i32_0 : i32, i32
  }
  func.func @transform_3(%arg0: i32) -> (i32, i32) {
    %c0_i32 = arith.constant 0 : i32
    %c0_i32_0 = arith.constant 0 : i32
    %c0_i32_1 = arith.constant 0 : i32
    return %c0_i32, %c0_i32_0 : i32, i32
  }
  func.func @transform_4(%arg0: i32) -> (i32, i32) {
    %c0_i32 = arith.constant 0 : i32
    %c0_i32_0 = arith.constant 0 : i32
    %c0_i32_1 = arith.constant 0 : i32
    return %c0_i32, %c0_i32_0 : i32, i32
  }
  func.func @transform_5(%arg0: i32) -> (i32, i32) {
    %c0_i32 = arith.constant 0 : i32
    %c0_i32_0 = arith.constant 0 : i32
    return %arg0, %c0_i32 : i32, i32
  }
}

</mosaic_0001>

<bundles_post_ra>
// kernel: tpu_custom_call.1
= control target key start
LH: loop header
LB: loop body
LE: loop exit
PB: predicated region body
PF: predicated region fallthrough
CT: control target
= control target key end

     0   :  { %10 = vsyncpa [#allocation3], 0  ;;  %s2296_s0 = inlined_call_operand.vmem [shape: f32[8,4], index: 0, kind: input, shape index: {}]   ;;  %s2297_s1 = inlined_call_operand.vmem [shape: bf16[4,512], index: 1, kind: input, shape index: {}]   ;;  %s2298_s2 = inlined_call_operand.hbm [shape: bf16[512,512], index: 2, kind: input, shape index: {}]   ;;  %s2299_s3 = inlined_call_operand.hbm [shape: bf16[512,256], index: 3, kind: input, shape index: {}]   ;;  %s2300_s4 = inlined_call_operand.vmem [shape: f32[1,1280], index: 4, kind: input, shape index: {}]   ;;  %s2301_s5 = inlined_call_operand.vmem [shape: f32[8,2], index: 5, kind: output, shape index: {}]  }
   0x1   :  { %11 = vsyncpa [#allocation5], 0  ;;  %s2197_s18 = smov [#allocation2]  }
   0x2   :  { %s21_s19 = sshll.u32 %s2197_s18, 4  ;;  %s22_s19 = int_to_ptr.vmem [resolvable:$true] %s21_s19 }
   0x3   :  { %s2161_s20 = scalar_lea.vmem %s22_s19, 16384  ;;  %p2166_p1 = scmp.lt.s32.totalorder %s22_s19, %s22_s19 }
   0x4   :  { %p2162_p0 = scmp.ne.s32.totalorder %s22_s19, %s2161_s20  ;;  %p2167_p2 = scmp.lt.s32.totalorder %s2161_s20, %s2161_s20 }
   0x6   :  { %p2168_p3 = por %p2167_p2, %p2166_p1 }
   0x8   :  { %p2169_p4 = pnand %p2168_p3, %p2162_p0 }
   0xa   :  { %2172 = shalt.err (!%p2169_p4)
}
   0xb   :  { %s2198_s21 = smov 256   ;;  %s2199_s22 = smov 16  }
   0xc   :  { %27 = dma.hbm_to_vmem [thread:$0]  %s2298_s2, 16384, %s22_s19, [#allocation3], %s2198_s21, %s2198_s21, %s2199_s22  }
   0xd   :  { %s2200_s25 = smov [#allocation4]  }
   0xe   :  { %s33_s26 = sshll.u32 %s2200_s25, 4  ;;  %s34_s26 = int_to_ptr.vmem [resolvable:$true] %s33_s26 }
   0xf   :  { %s2181_s27 = scalar_lea.vmem %s34_s26, 8192  ;;  %p2186_p6 = scmp.lt.s32.totalorder %s34_s26, %s34_s26 }
  0x10   :  { %p2182_p5 = scmp.ne.s32.totalorder %s34_s26, %s2181_s27  ;;  %p2187_p7 = scmp.lt.s32.totalorder %s2181_s27, %s2181_s27 }
  0x12   :  { %p2188_p8 = por %p2187_p7, %p2186_p6 }
  0x14   :  { %p2189_p9 = pnand %p2188_p8, %p2182_p5 }
  0x16   :  { %2192 = shalt.err (!%p2189_p9)
}
  0x17   :  { %s2201_s28 = smov 128   ;;  %s2202_s29 = smov 8  }
  0x18   :  { %39 = dma.hbm_to_vmem [thread:$0]  %s2299_s3, 8192, %s34_s26, [#allocation5], %s2201_s28, %s2201_s28, %s2202_s29  }
  0x19   :  { %2193 = dma.done.wait [#allocation3], 16384  }
  0x1a   :  { %2194 = vsyncadd [#allocation3], 4294950912 }
  0x1b   :  { %2195 = dma.done.wait [#allocation5], 8192  }
  0x1c   :  { %2196 = vsyncadd [#allocation5], 4294959104  ;;  %v56_v0 = vlaneseq  ;;  %v2203_v1 = vmov 1983009808   ;;  %v2204_v3 = vmov 0   ;;  %v54_v7 = vld [vmem:[%s2297_s1] sm:$0xff] }
  0x1d   :  { %v79_v2 = vunpack.c.l.s4 %v2203_v1  ;;  %143 = vmatprep.mubr.bf16.mxu0 %v2204_v3  ;;  %184 = vmatprep.mubr.bf16.mxu1 %v2204_v3  ;;  %vm98_vm0 = vcmask 1041408   ;;  %v77_v9 = vcombine.high %v54_v7, %v54_v7  ;;  %v52_v10 = vld [vmem:[%s2296_s0] sm:$0xff]  ;;  %vm94_vm1 = vcmask 31744  }
  0x1e   :  { %v2241_v4 = vshrl.u32 %v56_v0, 7  ;;  %1863 = vset.pattern.permute.xlu0 %v2204_v3  ;;  %v1867_v14 = vld [vmem:[#allocation2 + $0xe4] ss:$16 sps:$4 sm:$0xff]   ;;  %v53_v17 = vpack.c.bf16 %v52_v10, %v52_v10  ;;  %v1865_v19 = vld [vmem:[#allocation2 + $0xe0] ss:$16 sps:$4 sm:$0xff]   ;;  %vm1645_vm2 = vcmask 15360  }
  0x1f   :  { %v80_v5 = vunpack.c.0.s8 %v79_v2  ;;  %v1870_v18 = vld [vmem:[#allocation2 + $0x2e4] ss:$16 sps:$4 sm:$0xff]   ;;  %v1868_v21 = vld [vmem:[#allocation2 + $0x2e0] ss:$16 sps:$4 sm:$0xff]  }
  0x20   :  { %v1873_v20 = vld [vmem:[#allocation2 + $0xc4] ss:$16 sps:$4 sm:$0xff]   ;;  %v1871_v23 = vld [vmem:[#allocation2 + $0xc0] ss:$16 sps:$4 sm:$0xff]  }
  0x21   :  { %v83_v6 = vsub.s32 %v80_v5, %v2241_v4  ;;  %v1876_v22 = vld [vmem:[#allocation2 + $0x2c4] ss:$16 sps:$4 sm:$0xff]   ;;  %v1874_v25 = vld [vmem:[#allocation2 + $0x2c0] ss:$16 sps:$4 sm:$0xff]  }
  0x22   :  { %v1879_v24 = vld [vmem:[#allocation2 + $0xa4] ss:$16 sps:$4 sm:$0xff]   ;;  %v1877_v27 = vld [vmem:[#allocation2 + $0xa0] ss:$16 sps:$4 sm:$0xff]  }
  0x23   :  { %v84_v8 = vrot.slane %v54_v7, %v83_v6  ;;  %v91_v13 = vrot.slane %v77_v9, %v83_v6  ;;  %v1882_v26 = vld [vmem:[#allocation2 + $0x2a4] ss:$16 sps:$4 sm:$0xff]   ;;  %v1880_v29 = vld [vmem:[#allocation2 + $0x2a0] ss:$16 sps:$4 sm:$0xff]  }
  0x24   :  { %v1885_v28 = vld [vmem:[#allocation2 + $0x84] ss:$16 sps:$4 sm:$0xff]   ;;  %v1883_v31 = vld [vmem:[#allocation2 + $0x80] ss:$16 sps:$4 sm:$0xff]  }
  0x25   :  { %v92_v11 = vcombine.high %v84_v8, %v84_v8  ;;  %v100_v12 = vsel %vm98_vm0, %v84_v8, 0  ;;  %v93_v15 = vcombine.high %v91_v13, %v91_v13  ;;  %v106_v16 = vsel %vm98_vm0, %v91_v13, 0  ;;  %v1888_v30 = vld [vmem:[#allocation2 + $0x284] ss:$16 sps:$4 sm:$0xff]   ;;  %v1886_v33 = vld [vmem:[#allocation2 + $0x280] ss:$16 sps:$4 sm:$0xff]  }
  0x26   :  { %v1891_v32 = vld [vmem:[#allocation2 + $0x64] ss:$16 sps:$4 sm:$0xff]   ;;  %v1889_v35 = vld [vmem:[#allocation2 + $0x60] ss:$16 sps:$4 sm:$0xff]  }
  0x27   :  { %1659 = vmatprep.subr.msk.bf16.mxu0 %vm98_vm0, %v92_v11  ;;  %1661 = vmatprep.subr.msk.bf16.mxu1 %vm98_vm0, %v93_v15  ;;  %v1894_v34 = vld [vmem:[#allocation2 + $0x264] ss:$16 sps:$4 sm:$0xff]   ;;  %v1892_v37 = vld [vmem:[#allocation2 + $0x260] ss:$16 sps:$4 sm:$0xff]  }
  0x28   :  { %126 = vmatpush1.bf16.msra.mxu0 %v100_v12  ;;  %167 = vmatpush1.bf16.msra.mxu1 %v106_v16  ;;  %v1897_v36 = vld [vmem:[#allocation2 + $0x44] ss:$16 sps:$4 sm:$0xff]   ;;  %v1895_v39 = vld [vmem:[#allocation2 + $0x40] ss:$16 sps:$4 sm:$0xff]  }
  0x29   :  { %990 = vmatprep.subr.bf16.mxu0 %v1867_v14  ;;  %1031 = vmatprep.subr.bf16.mxu1 %v1870_v18  ;;  %v1900_v38 = vld [vmem:[#allocation2 + $0x244] ss:$16 sps:$4 sm:$0xff]   ;;  %v1898_v41 = vld [vmem:[#allocation2 + $0x240] ss:$16 sps:$4 sm:$0xff]   ;;  %v1963_v18 = vld [vmem:[#allocation2 + $0xec] ss:$16 sps:$4 sm:$0xff]  }
  0x2a   :  { %v1903_v40 = vld [vmem:[#allocation2 + $0x24] ss:$16 sps:$4 sm:$0xff]   ;;  %v1901_v43 = vld [vmem:[#allocation2 + $0x20] ss:$16 sps:$4 sm:$0xff]  }
  0x2b   :  { %1660 = vmatmul.mubr.msk.bf16.vlgmr.msra.gmra.mxu0 %vm94_vm1, %v53_v17  ;;  %1662 = vmatmul.mubr.msk.bf16.vlgmr.msra.gmra.mxu1 %vm94_vm1, %v53_v17  ;;  %v1906_v42 = vld [vmem:[#allocation2 + $0x224] ss:$16 sps:$4 sm:$0xff]   ;;  %v1904_v45 = vld [vmem:[#allocation2 + $0x220] ss:$16 sps:$4 sm:$0xff]  }
  0x2c   :  { %991 = vmatpush1.bf16.msra.mxu0 %v1865_v19  ;;  %1032 = vmatpush1.bf16.msra.mxu1 %v1868_v21  ;;  %v1909_v44 = vld [vmem:[#allocation2 + $0x4] ss:$16 sps:$4 sm:$0xff]   ;;  %v1907_v47 = vld [vmem:[#allocation2] ss:$16 sps:$4 sm:$0xff]   ;;  %v1966_v19 = vld [vmem:[#allocation2 + $0x2ec] ss:$16 sps:$4 sm:$0xff]  }
  0x2d   :  { %992 = vmatprep.subr.bf16.mxu0 %v1873_v20  ;;  %1033 = vmatprep.subr.bf16.mxu1 %v1876_v22  ;;  %v1912_v46 = vld [vmem:[#allocation2 + $0x204] ss:$16 sps:$4 sm:$0xff]   ;;  %v1910_v49 = vld [vmem:[#allocation2 + $0x200] ss:$16 sps:$4 sm:$0xff]   ;;  %v2255_v20 = vsub.s32 0, %v2241_v4  ;;  %v2261_v22 = vsub.s32 1, %v2241_v4 }
  0x2e   :  { %v1915_v48 = vld [vmem:[#allocation2 + $0x1e4] ss:$16 sps:$4 sm:$0xff]   ;;  %v1913_v50 = vld [vmem:[#allocation2 + $0x1e0] ss:$16 sps:$4 sm:$0xff]  }
  0x2f   :  { %v1918_v51 = vld [vmem:[#allocation2 + $0x3e4] ss:$16 sps:$4 sm:$0xff]   ;;  %v1916_v52 = vld [vmem:[#allocation2 + $0x3e0] ss:$16 sps:$4 sm:$0xff]  }
  0x30   :  { %993 = vmatpush1.bf16.msra.mxu0 %v1871_v23  ;;  %1034 = vmatpush1.bf16.msra.mxu1 %v1874_v25  ;;  %v1921_v53 = vld [vmem:[#allocation2 + $0x1c4] ss:$16 sps:$4 sm:$0xff]   ;;  %v1919_v55 = vld [vmem:[#allocation2 + $0x1c0] ss:$16 sps:$4 sm:$0xff]   ;;  %v66_v23 = vsub.s32 2, %v2241_v4  ;;  %v70_v25 = vsub.s32 3, %v2241_v4 }
  0x31   :  { %994 = vmatprep.subr.bf16.mxu0 %v1879_v24  ;;  %1035 = vmatprep.subr.bf16.mxu1 %v1882_v26  ;;  %v1924_v54 = vld [vmem:[#allocation2 + $0x3c4] ss:$16 sps:$4 sm:$0xff]   ;;  %v1922_v57 = vld [vmem:[#allocation2 + $0x3c0] ss:$16 sps:$4 sm:$0xff]  }
  0x32   :  { %v1927_v56 = vld [vmem:[#allocation2 + $0x1a4] ss:$16 sps:$4 sm:$0xff]   ;;  %v1925_v59 = vld [vmem:[#allocation2 + $0x1a0] ss:$16 sps:$4 sm:$0xff]  }
  0x33   :  { %v1930_v58 = vld [vmem:[#allocation2 + $0x3a4] ss:$16 sps:$4 sm:$0xff]   ;;  %v1928_v61 = vld [vmem:[#allocation2 + $0x3a0] ss:$16 sps:$4 sm:$0xff]  }
  0x34   :  { %995 = vmatpush1.bf16.msra.mxu0 %v1877_v27  ;;  %1036 = vmatpush1.bf16.msra.mxu1 %v1880_v29  ;;  %v1933_v60 = vld [vmem:[#allocation2 + $0x184] ss:$16 sps:$4 sm:$0xff]   ;;  %v1931_v63 = vld [vmem:[#allocation2 + $0x180] ss:$16 sps:$4 sm:$0xff]  }
  0x35   :  { %996 = vmatprep.subr.bf16.mxu0 %v1885_v28  ;;  %1037 = vmatprep.subr.bf16.mxu1 %v1888_v30  ;;  %v1936_v62 = vld [vmem:[#allocation2 + $0x384] ss:$16 sps:$4 sm:$0xff]   ;;  %v1934_v1 = vld [vmem:[#allocation2 + $0x380] ss:$16 sps:$4 sm:$0xff]  }
  0x36   :  { %v1939_v0 = vld [vmem:[#allocation2 + $0x164] ss:$16 sps:$4 sm:$0xff]   ;;  %v1937_v3 = vld [vmem:[#allocation2 + $0x160] ss:$16 sps:$4 sm:$0xff]  }
  0x37   :  { %v1942_v2 = vld [vmem:[#allocation2 + $0x364] ss:$16 sps:$4 sm:$0xff]   ;;  %v1940_v6 = vld [vmem:[#allocation2 + $0x360] ss:$16 sps:$4 sm:$0xff]  }
  0x38   :  { %997 = vmatpush1.bf16.msra.mxu0 %v1883_v31  ;;  %1038 = vmatpush1.bf16.msra.mxu1 %v1886_v33  ;;  %v1945_v5 = vld [vmem:[#allocation2 + $0x144] ss:$16 sps:$4 sm:$0xff]   ;;  %v1943_v8 = vld [vmem:[#allocation2 + $0x140] ss:$16 sps:$4 sm:$0xff]  }
  0x39   :  { %998 = vmatprep.subr.bf16.mxu0 %v1891_v32  ;;  %1039 = vmatprep.subr.bf16.mxu1 %v1894_v34  ;;  %v1948_v7 = vld [vmem:[#allocation2 + $0x344] ss:$16 sps:$4 sm:$0xff]   ;;  %v1946_v9 = vld [vmem:[#allocation2 + $0x340] ss:$16 sps:$4 sm:$0xff]  }
  0x3a   :  { %v1951_v10 = vld [vmem:[#allocation2 + $0x124] ss:$16 sps:$4 sm:$0xff]   ;;  %v1949_v11 = vld [vmem:[#allocation2 + $0x120] ss:$16 sps:$4 sm:$0xff]  }
  0x3b   :  { %v1954_v12 = vld [vmem:[#allocation2 + $0x324] ss:$16 sps:$4 sm:$0xff]   ;;  %v1952_v13 = vld [vmem:[#allocation2 + $0x320] ss:$16 sps:$4 sm:$0xff]  }
  0x3c   :  { %999 = vmatpush1.bf16.msra.mxu0 %v1889_v35  ;;  %1040 = vmatpush1.bf16.msra.mxu1 %v1892_v37  ;;  %v1957_v14 = vld [vmem:[#allocation2 + $0x104] ss:$16 sps:$4 sm:$0xff]   ;;  %v1955_v15 = vld [vmem:[#allocation2 + $0x100] ss:$16 sps:$4 sm:$0xff]  }
  0x3d   :  { %1000 = vmatprep.subr.bf16.mxu0 %v1897_v36  ;;  %1041 = vmatprep.subr.bf16.mxu1 %v1900_v38  ;;  %v1960_v16 = vld [vmem:[#allocation2 + $0x304] ss:$16 sps:$4 sm:$0xff]   ;;  %v1958_v17 = vld [vmem:[#allocation2 + $0x300] ss:$16 sps:$4 sm:$0xff]  }
  0x3e   :  { %v49_v21 = vld [vmem:[%s2300_s4] sm:$0xf] }
  0x3f   :  { %v59_v24 = vrot.slane %v49_v21, %v2255_v20  ;;  %v63_v26 = vrot.slane %v49_v21, %v2261_v22  ;;  %v67_v27 = vrot.slane %v49_v21, %v66_v23  ;;  %v71_v30 = vrot.slane %v49_v21, %v70_v25  ;;  %v2012_v21 = vld [vmem:[#allocation2 + $0x3e8] ss:$16 sps:$4 sm:$0xff]  }
  0x40   :  { %1001 = vmatpush1.bf16.msra.mxu0 %v1895_v39  ;;  %1042 = vmatpush1.bf16.msra.mxu1 %v1898_v41 }
  0x41   :  { %1002 = vmatprep.subr.bf16.mxu0 %v1903_v40  ;;  %1043 = vmatprep.subr.bf16.mxu1 %v1906_v42 }
  0x44   :  { %1003 = vmatpush1.bf16.msra.mxu0 %v1901_v43  ;;  %1044 = vmatpush1.bf16.msra.mxu1 %v1904_v45  ;;  %v1961_v45 = vld [vmem:[#allocation2 + $0xe8] ss:$16 sps:$4 sm:$0xff]  }
  0x45   :  { %1004 = vmatprep.subr.bf16.mxu0 %v1909_v44  ;;  %1045 = vmatprep.subr.bf16.mxu1 %v1912_v46 }
  0x48   :  { %1005 = vmatpush1.bf16.msra.mxu0 %v1907_v47  ;;  %1046 = vmatpush1.bf16.msra.mxu1 %v1910_v49  ;;  %v1964_v49 = vld [vmem:[#allocation2 + $0x2e8] ss:$16 sps:$4 sm:$0xff]  }
  0x49   :  { %1006 = vmatprep.subr.bf16.mxu0 %v1915_v48  ;;  %1047 = vmatprep.subr.bf16.mxu1 %v1918_v51 }
  0x4c   :  { %1007 = vmatpush2.bf16.msra.mxu0 %v1913_v50  ;;  %1048 = vmatpush2.bf16.msra.mxu1 %v1916_v52  ;;  %v1969_v50 = vld [vmem:[#allocation2 + $0xcc] ss:$16 sps:$4 sm:$0xff]  }
  0x4d   :  { %1008 = vmatprep.subr.bf16.mxu0 %v1921_v53  ;;  %1049 = vmatprep.subr.bf16.mxu1 %v1924_v54  ;;  %v1972_v52 = vld [vmem:[#allocation2 + $0x2cc] ss:$16 sps:$4 sm:$0xff]   ;;  %v1967_v53 = vld [vmem:[#allocation2 + $0xc8] ss:$16 sps:$4 sm:$0xff]  }
  0x4e   :  { %v1975_v54 = vld [vmem:[#allocation2 + $0xac] ss:$16 sps:$4 sm:$0xff]  }
  0x50   :  { %1009 = vmatpush2.bf16.msra.mxu0 %v1919_v55  ;;  %1050 = vmatpush2.bf16.msra.mxu1 %v1922_v57  ;;  %v1970_v55 = vld [vmem:[#allocation2 + $0x2c8] ss:$16 sps:$4 sm:$0xff]  }
  0x51   :  { %1010 = vmatprep.subr.bf16.mxu0 %v1927_v56  ;;  %1051 = vmatprep.subr.bf16.mxu1 %v1930_v58  ;;  %v1978_v56 = vld [vmem:[#allocation2 + $0x2ac] ss:$16 sps:$4 sm:$0xff]   ;;  %v1973_v57 = vld [vmem:[#allocation2 + $0xa8] ss:$16 sps:$4 sm:$0xff]  }
  0x52   :  { %v1981_v58 = vld [vmem:[#allocation2 + $0x8c] ss:$16 sps:$4 sm:$0xff]  }
  0x54   :  { %1011 = vmatpush2.bf16.msra.mxu0 %v1925_v59  ;;  %1052 = vmatpush2.bf16.msra.mxu1 %v1928_v61  ;;  %v1976_v59 = vld [vmem:[#allocation2 + $0x2a8] ss:$16 sps:$4 sm:$0xff]  }
  0x55   :  { %1012 = vmatprep.subr.bf16.mxu0 %v1933_v60  ;;  %1053 = vmatprep.subr.bf16.mxu1 %v1936_v62  ;;  %v1984_v60 = vld [vmem:[#allocation2 + $0x28c] ss:$16 sps:$4 sm:$0xff]   ;;  %v1979_v61 = vld [vmem:[#allocation2 + $0x88] ss:$16 sps:$4 sm:$0xff]  }
  0x56   :  { %v1987_v62 = vld [vmem:[#allocation2 + $0x6c] ss:$16 sps:$4 sm:$0xff]  }
  0x58   :  { %1013 = vmatpush2.bf16.msra.mxu0 %v1931_v63  ;;  %1054 = vmatpush2.bf16.msra.mxu1 %v1934_v1  ;;  %v1982_v63 = vld [vmem:[#allocation2 + $0x288] ss:$16 sps:$4 sm:$0xff]  }
  0x59   :  { %1014 = vmatprep.subr.bf16.mxu0 %v1939_v0  ;;  %1055 = vmatprep.subr.bf16.mxu1 %v1942_v2  ;;  %v1990_v0 = vld [vmem:[#allocation2 + $0x26c] ss:$16 sps:$4 sm:$0xff]   ;;  %v1985_v1 = vld [vmem:[#allocation2 + $0x68] ss:$16 sps:$4 sm:$0xff]  }
  0x5a   :  { %v1993_v2 = vld [vmem:[#allocation2 + $0x4c] ss:$16 sps:$4 sm:$0xff]  }
  0x5c   :  { %1015 = vmatpush2.bf16.msra.mxu0 %v1937_v3  ;;  %1056 = vmatpush2.bf16.msra.mxu1 %v1940_v6  ;;  %v1988_v3 = vld [vmem:[#allocation2 + $0x268] ss:$16 sps:$4 sm:$0xff]  }
  0x5d   :  { %1016 = vmatprep.subr.bf16.mxu0 %v1945_v5  ;;  %1057 = vmatprep.subr.bf16.mxu1 %v1948_v7  ;;  %v1996_v5 = vld [vmem:[#allocation2 + $0x24c] ss:$16 sps:$4 sm:$0xff]   ;;  %v1991_v6 = vld [vmem:[#allocation2 + $0x48] ss:$16 sps:$4 sm:$0xff]  }
  0x5e   :  { %v1999_v7 = vld [vmem:[#allocation2 + $0x2c] ss:$16 sps:$4 sm:$0xff]  }
  0x60   :  { %1017 = vmatpush2.bf16.msra.mxu0 %v1943_v8  ;;  %1058 = vmatpush2.bf16.msra.mxu1 %v1946_v9  ;;  %v1994_v8 = vld [vmem:[#allocation2 + $0x248] ss:$16 sps:$4 sm:$0xff]   ;;  %v2002_v9 = vld [vmem:[#allocation2 + $0x22c] ss:$16 sps:$4 sm:$0xff]  }
  0x61   :  { %1018 = vmatprep.subr.bf16.mxu0 %v1951_v10  ;;  %1059 = vmatprep.subr.bf16.mxu1 %v1954_v12  ;;  %v1997_v10 = vld [vmem:[#allocation2 + $0x28] ss:$16 sps:$4 sm:$0xff]  }
  0x62   :  { %v2000_v12 = vld [vmem:[#allocation2 + $0x228] ss:$16 sps:$4 sm:$0xff]  }
  0x64   :  { %1019 = vmatpush2.bf16.msra.mxu0 %v1949_v11  ;;  %1060 = vmatpush2.bf16.msra.mxu1 %v1952_v13  ;;  %v2005_v11 = vld [vmem:[#allocation2 + $0xc] ss:$16 sps:$4 sm:$0xff]  }
  0x65   :  { %1020 = vmatprep.subr.bf16.mxu0 %v1957_v14  ;;  %1061 = vmatprep.subr.bf16.mxu1 %v1960_v16  ;;  %v2008_v13 = vld [vmem:[#allocation2 + $0x20c] ss:$16 sps:$4 sm:$0xff]   ;;  %v2003_v14 = vld [vmem:[#allocation2 + $0x8] ss:$16 sps:$4 sm:$0xff]  }
  0x66   :  { %v2006_v16 = vld [vmem:[#allocation2 + $0x208] ss:$16 sps:$4 sm:$0xff]  }
  0x68   :  { %1021 = vmatpush2.bf16.msra.mxu0 %v1955_v15  ;;  %1062 = vmatpush2.bf16.msra.mxu1 %v1958_v17  ;;  %v2011_v15 = vld [vmem:[#allocation2 + $0x1ec] ss:$16 sps:$4 sm:$0xff]  }
  0x69   :  { %1072 = vmatprep.subr.bf16.mxu0 %v1963_v18  ;;  %1113 = vmatprep.subr.bf16.mxu1 %v1966_v19  ;;  %v2014_v17 = vld [vmem:[#allocation2 + $0x3ec] ss:$16 sps:$4 sm:$0xff]   ;;  %v2009_v18 = vld [vmem:[#allocation2 + $0x1e8] ss:$16 sps:$4 sm:$0xff]  }
  0x6a   :  { %v2017_v19 = vld [vmem:[#allocation2 + $0x1cc] ss:$16 sps:$4 sm:$0xff]  }
  0xeb   :  { %v145_v28 = vpop.f32.mrf.mxu0  ;;  %v186_v32 = vpop.f32.mrf.mxu1 }
  0xec   :  { %v146_v29 = vadd.f32 %v145_v28, %v59_v24  ;;  %v187_v34 = vadd.f32 %v186_v32, %v67_v27  ;;  %v2020_v24 = vld [vmem:[#allocation2 + $0x3cc] ss:$16 sps:$4 sm:$0xff]   ;;  %v2018_v28 = vld [vmem:[#allocation2 + $0x3c8] ss:$16 sps:$4 sm:$0xff]  }
  0xed   :  { %v147_v31 = vpop.f32.mrf.mxu0  ;;  %v188_v37 = vpop.f32.mrf.mxu1  ;;  %v2023_v27 = vld [vmem:[#allocation2 + $0x1ac] ss:$16 sps:$4 sm:$0xff]   ;;  %v2024_v32 = vld [vmem:[#allocation2 + $0x3a8] ss:$16 sps:$4 sm:$0xff]  }
  0xee   :  { %v148_v33 = vadd.f32 %v147_v31, %v63_v26  ;;  %v193_v35 = vmax.f32 %v146_v29, 0.0  ;;  %v189_v39 = vadd.f32 %v188_v37, %v71_v30  ;;  %v195_v40 = vmax.f32 %v187_v34, 0.0  ;;  %v2015_v26 = vld [vmem:[#allocation2 + $0x1c8] ss:$16 sps:$4 sm:$0xff]   ;;  %v2026_v29 = vld [vmem:[#allocation2 + $0x3ac] ss:$16 sps:$4 sm:$0xff]  }
  0xef   :  { %v149_v36 = vpop.f32.mrf.mxu0  ;;  %v190_v42 = vpop.f32.mrf.mxu1  ;;  %v2021_v30 = vld [vmem:[#allocation2 + $0x1a8] ss:$16 sps:$4 sm:$0xff]   ;;  %v2029_v31 = vld [vmem:[#allocation2 + $0x18c] ss:$16 sps:$4 sm:$0xff]  }
  0xf0   :  { %v194_v38 = vmax.f32 %v148_v33, 0.0  ;;  %v196_v44 = vmax.f32 %v189_v39, 0.0  ;;  %v2271_v46 = vpack.c.bf16 %v193_v35, %v193_v35  ;;  %v2273_v51 = vpack.c.bf16 %v195_v40, %v195_v40  ;;  %v2032_v33 = vld [vmem:[#allocation2 + $0x38c] ss:$16 sps:$4 sm:$0xff]   ;;  %v2027_v34 = vld [vmem:[#allocation2 + $0x188] ss:$16 sps:$4 sm:$0xff]  }
  0xf1   :  { %v150_v41 = vpop.f32.mrf.mxu0  ;;  %v191_v47 = vpop.f32.mrf.mxu1  ;;  %v2035_v35 = vld [vmem:[#allocation2 + $0x16c] ss:$16 sps:$4 sm:$0xff]   ;;  %v2030_v36 = vld [vmem:[#allocation2 + $0x388] ss:$16 sps:$4 sm:$0xff]  }
  0xf2   :  { %v198_v43 = vpack.c.bf16 %v194_v38, %v194_v38  ;;  %v200_v48 = vpack.c.bf16 %v196_v44, %v196_v44  ;;  %v2038_v37 = vld [vmem:[#allocation2 + $0x36c] ss:$16 sps:$4 sm:$0xff]   ;;  %v2033_v38 = vld [vmem:[#allocation2 + $0x168] ss:$16 sps:$4 sm:$0xff]  }
  0xf3   :  { %v2041_v39 = vld [vmem:[#allocation2 + $0x14c] ss:$16 sps:$4 sm:$0xff]   ;;  %v2036_v40 = vld [vmem:[#allocation2 + $0x368] ss:$16 sps:$4 sm:$0xff]  }
  0xf4   :  { %1022 = vmatprep.mubr.bf16.mxu0 %v198_v43  ;;  %1063 = vmatprep.mubr.bf16.mxu1 %v200_v48  ;;  %v2044_v41 = vld [vmem:[#allocation2 + $0x34c] ss:$16 sps:$4 sm:$0xff]   ;;  %v2039_v42 = vld [vmem:[#allocation2 + $0x148] ss:$16 sps:$4 sm:$0xff]  }
  0xf5   :  { %1023 = vmatmul.mubr.bf16.vlgmr.msra.gmra.mxu0 %v2271_v46  ;;  %1064 = vmatmul.mubr.bf16.vlgmr.msra.gmra.mxu1 %v2273_v51  ;;  %v2042_v44 = vld [vmem:[#allocation2 + $0x348] ss:$16 sps:$4 sm:$0xff]  }
  0xf6   :  { %1073 = vmatpush1.bf16.msra.mxu0 %v1961_v45  ;;  %1104 = vmatprep.mubr.bf16.mxu0 %v198_v43  ;;  %v2047_v43 = vld [vmem:[#allocation2 + $0x12c] ss:$16 sps:$4 sm:$0xff]   ;;  %v2045_v47 = vld [vmem:[#allocation2 + $0x128] ss:$16 sps:$4 sm:$0xff]  }
  0xf7   :  { %1114 = vmatpush1.bf16.msra.mxu1 %v1964_v49  ;;  %1074 = vmatprep.subr.bf16.mxu0 %v1969_v50  ;;  %v2050_v45 = vld [vmem:[#allocation2 + $0x32c] ss:$16 sps:$4 sm:$0xff]   ;;  %v2048_v49 = vld [vmem:[#allocation2 + $0x328] ss:$16 sps:$4 sm:$0xff]  }
  0xf8   :  { %1145 = vmatprep.mubr.bf16.mxu1 %v200_v48  ;;  %1115 = vmatprep.subr.bf16.mxu1 %v1972_v52  ;;  %v2053_v48 = vld [vmem:[#allocation2 + $0x10c] ss:$16 sps:$4 sm:$0xff]   ;;  %v2051_v52 = vld [vmem:[#allocation2 + $0x108] ss:$16 sps:$4 sm:$0xff]  }
  0xf9   :  { %v2056_v50 = vld [vmem:[#allocation2 + $0x30c] ss:$16 sps:$4 sm:$0xff]  }
  0xfa   :  { %1075 = vmatpush1.bf16.msra.mxu0 %v1967_v53  ;;  %v2059_v53 = vld [vmem:[#allocation4 + $0x74] ss:$8 sps:$4 sm:$0xff]  }
  0xfb   :  { %1076 = vmatprep.subr.bf16.mxu0 %v1975_v54  ;;  %1116 = vmatpush1.bf16.msra.mxu1 %v1970_v55  ;;  %v2054_v54 = vld [vmem:[#allocation2 + $0x308] ss:$16 sps:$4 sm:$0xff]  }
  0xfc   :  { %1117 = vmatprep.subr.bf16.mxu1 %v1978_v56  ;;  %v2057_v55 = vld [vmem:[#allocation4 + $0x70] ss:$8 sps:$4 sm:$0xff]   ;;  %v2062_v56 = vld [vmem:[#allocation4 + $0x64] ss:$8 sps:$4 sm:$0xff]  }
  0xfe   :  { %1077 = vmatpush1.bf16.msra.mxu0 %v1973_v57  ;;  %v2060_v57 = vld [vmem:[#allocation4 + $0x60] ss:$8 sps:$4 sm:$0xff]  }
  0xff   :  { %1078 = vmatprep.subr.bf16.mxu0 %v1981_v58  ;;  %1118 = vmatpush1.bf16.msra.mxu1 %v1976_v59  ;;  %v2065_v58 = vld [vmem:[#allocation4 + $0x54] ss:$8 sps:$4 sm:$0xff]   ;;  %v2063_v59 = vld [vmem:[#allocation4 + $0x50] ss:$8 sps:$4 sm:$0xff]  }
 0x100   :  { %1119 = vmatprep.subr.bf16.mxu1 %v1984_v60  ;;  %v2068_v60 = vld [vmem:[#allocation4 + $0x44] ss:$8 sps:$4 sm:$0xff]  }
 0x102   :  { %1079 = vmatpush1.bf16.msra.mxu0 %v1979_v61  ;;  %v2066_v61 = vld [vmem:[#allocation4 + $0x40] ss:$8 sps:$4 sm:$0xff]  }
 0x103   :  { %1080 = vmatprep.subr.bf16.mxu0 %v1987_v62  ;;  %1120 = vmatpush1.bf16.msra.mxu1 %v1982_v63  ;;  %v2071_v62 = vld [vmem:[#allocation4 + $0x34] ss:$8 sps:$4 sm:$0xff]  }
 0x104   :  { %1121 = vmatprep.subr.bf16.mxu1 %v1990_v0  ;;  %v2107_v63 = vld [vmem:[#allocation4 + $0x174] ss:$8 sps:$4 sm:$0xff]   ;;  %v2105_v0 = vld [vmem:[#allocation4 + $0x170] ss:$8 sps:$4 sm:$0xff]  }
 0x106   :  { %1081 = vmatpush1.bf16.msra.mxu0 %v1985_v1  ;;  %v2110_v1 = vld [vmem:[#allocation4 + $0x164] ss:$8 sps:$4 sm:$0xff]  }
 0x107   :  { %1082 = vmatprep.subr.bf16.mxu0 %v1993_v2  ;;  %1122 = vmatpush1.bf16.msra.mxu1 %v1988_v3  ;;  %v2108_v2 = vld [vmem:[#allocation4 + $0x160] ss:$8 sps:$4 sm:$0xff]   ;;  %v2113_v3 = vld [vmem:[#allocation4 + $0x154] ss:$8 sps:$4 sm:$0xff]  }
 0x108   :  { %1123 = vmatprep.subr.bf16.mxu1 %v1996_v5  ;;  %v2072_v5 = vld [vmem:[#allocation4 + $0x20] ss:$8 sps:$4 sm:$0xff]  }
 0x10a   :  { %1083 = vmatpush1.bf16.msra.mxu0 %v1991_v6  ;;  %v2111_v6 = vld [vmem:[#allocation4 + $0x150] ss:$8 sps:$4 sm:$0xff]  }
 0x10b   :  { %1084 = vmatprep.subr.bf16.mxu0 %v1999_v7  ;;  %1124 = vmatpush1.bf16.msra.mxu1 %v1994_v8  ;;  %v2077_v7 = vld [vmem:[#allocation4 + $0x14] ss:$8 sps:$4 sm:$0xff]   ;;  %v2116_v8 = vld [vmem:[#allocation4 + $0x144] ss:$8 sps:$4 sm:$0xff]  }
 0x10c   :  { %1125 = vmatprep.subr.bf16.mxu1 %v2002_v9  ;;  %v2075_v9 = vld [vmem:[#allocation4 + $0x10] ss:$8 sps:$4 sm:$0xff]  }
 0x10e   :  { %1085 = vmatpush1.bf16.msra.mxu0 %v1997_v10  ;;  %v2114_v10 = vld [vmem:[#allocation4 + $0x140] ss:$8 sps:$4 sm:$0xff]  }
 0x10f   :  { %1086 = vmatprep.subr.bf16.mxu0 %v2005_v11  ;;  %1126 = vmatpush1.bf16.msra.mxu1 %v2000_v12  ;;  %v2080_v11 = vld [vmem:[#allocation4 + $0x4] ss:$8 sps:$4 sm:$0xff]   ;;  %v2119_v12 = vld [vmem:[#allocation4 + $0x134] ss:$8 sps:$4 sm:$0xff]  }
 0x110   :  { %1127 = vmatprep.subr.bf16.mxu1 %v2008_v13  ;;  %v2078_v13 = vld [vmem:[#allocation4] ss:$8 sps:$4 sm:$0xff]  }
 0x112   :  { %1087 = vmatpush1.bf16.msra.mxu0 %v2003_v14  ;;  %v2117_v14 = vld [vmem:[#allocation4 + $0x130] ss:$8 sps:$4 sm:$0xff]  }
 0x113   :  { %1088 = vmatprep.subr.bf16.mxu0 %v2011_v15  ;;  %1128 = vmatpush1.bf16.msra.mxu1 %v2006_v16  ;;  %v2083_v15 = vld [vmem:[#allocation4 + $0xf4] ss:$8 sps:$4 sm:$0xff]   ;;  %v2122_v16 = vld [vmem:[#allocation4 + $0x124] ss:$8 sps:$4 sm:$0xff]  }
 0x114   :  { %1129 = vmatprep.subr.bf16.mxu1 %v2014_v17  ;;  %v2081_v17 = vld [vmem:[#allocation4 + $0xf0] ss:$8 sps:$4 sm:$0xff]  }
 0x116   :  { %1089 = vmatpush2.bf16.msra.mxu0 %v2009_v18  ;;  %v2120_v18 = vld [vmem:[#allocation4 + $0x120] ss:$8 sps:$4 sm:$0xff]  }
 0x117   :  { %1090 = vmatprep.subr.bf16.mxu0 %v2017_v19  ;;  %1130 = vmatpush2.bf16.msra.mxu1 %v2012_v21  ;;  %v2086_v19 = vld [vmem:[#allocation4 + $0xe4] ss:$8 sps:$4 sm:$0xff]   ;;  %v2125_v21 = vld [vmem:[#allocation4 + $0x114] ss:$8 sps:$4 sm:$0xff]  }
 0x118   :  { %1131 = vmatprep.subr.bf16.mxu1 %v2020_v24  ;;  %v2084_v24 = vld [vmem:[#allocation4 + $0xe0] ss:$8 sps:$4 sm:$0xff]  }
 0x11a   :  { %1091 = vmatpush2.bf16.msra.mxu0 %v2015_v26  ;;  %v2123_v26 = vld [vmem:[#allocation4 + $0x110] ss:$8 sps:$4 sm:$0xff]  }
 0x11b   :  { %1092 = vmatprep.subr.bf16.mxu0 %v2023_v27  ;;  %1132 = vmatpush2.bf16.msra.mxu1 %v2018_v28  ;;  %v2089_v27 = vld [vmem:[#allocation4 + $0xd4] ss:$8 sps:$4 sm:$0xff]   ;;  %v2128_v28 = vld [vmem:[#allocation4 + $0x104] ss:$8 sps:$4 sm:$0xff]  }
 0x11c   :  { %1133 = vmatprep.subr.bf16.mxu1 %v2026_v29  ;;  %v2087_v29 = vld [vmem:[#allocation4 + $0xd0] ss:$8 sps:$4 sm:$0xff]  }
 0x11e   :  { %1093 = vmatpush2.bf16.msra.mxu0 %v2021_v30  ;;  %v2126_v30 = vld [vmem:[#allocation4 + $0x100] ss:$8 sps:$4 sm:$0xff]  }
 0x11f   :  { %1094 = vmatprep.subr.bf16.mxu0 %v2029_v31  ;;  %1134 = vmatpush2.bf16.msra.mxu1 %v2024_v32  ;;  %v2092_v31 = vld [vmem:[#allocation4 + $0xc4] ss:$8 sps:$4 sm:$0xff]   ;;  %v2131_v32 = vld [vmem:[#allocation4 + $0x1f4] ss:$8 sps:$4 sm:$0xff]  }
 0x120   :  { %1135 = vmatprep.subr.bf16.mxu1 %v2032_v33  ;;  %v2090_v33 = vld [vmem:[#allocation4 + $0xc0] ss:$8 sps:$4 sm:$0xff]  }
 0x122   :  { %1095 = vmatpush2.bf16.msra.mxu0 %v2027_v34  ;;  %v2129_v34 = vld [vmem:[#allocation4 + $0x1f0] ss:$8 sps:$4 sm:$0xff]  }
 0x123   :  { %1096 = vmatprep.subr.bf16.mxu0 %v2035_v35  ;;  %1136 = vmatpush2.bf16.msra.mxu1 %v2030_v36  ;;  %v2095_v35 = vld [vmem:[#allocation4 + $0xb4] ss:$8 sps:$4 sm:$0xff]   ;;  %v2134_v36 = vld [vmem:[#allocation4 + $0x1e4] ss:$8 sps:$4 sm:$0xff]  }
 0x124   :  { %1137 = vmatprep.subr.bf16.mxu1 %v2038_v37  ;;  %v2093_v37 = vld [vmem:[#allocation4 + $0xb0] ss:$8 sps:$4 sm:$0xff]  }
 0x126   :  { %1097 = vmatpush2.bf16.msra.mxu0 %v2033_v38  ;;  %v2132_v38 = vld [vmem:[#allocation4 + $0x1e0] ss:$8 sps:$4 sm:$0xff]  }
 0x127   :  { %1098 = vmatprep.subr.bf16.mxu0 %v2041_v39  ;;  %1138 = vmatpush2.bf16.msra.mxu1 %v2036_v40  ;;  %v2098_v39 = vld [vmem:[#allocation4 + $0xa4] ss:$8 sps:$4 sm:$0xff]   ;;  %v2137_v40 = vld [vmem:[#allocation4 + $0x1d4] ss:$8 sps:$4 sm:$0xff]  }
 0x128   :  { %1139 = vmatprep.subr.bf16.mxu1 %v2044_v41  ;;  %v2096_v41 = vld [vmem:[#allocation4 + $0xa0] ss:$8 sps:$4 sm:$0xff]  }
 0x12a   :  { %1099 = vmatpush2.bf16.msra.mxu0 %v2039_v42  ;;  %v2135_v42 = vld [vmem:[#allocation4 + $0x1d0] ss:$8 sps:$4 sm:$0xff]  }
 0x12b   :  { %1100 = vmatprep.subr.bf16.mxu0 %v2047_v43  ;;  %1140 = vmatpush2.bf16.msra.mxu1 %v2042_v44  ;;  %v2101_v43 = vld [vmem:[#allocation4 + $0x94] ss:$8 sps:$4 sm:$0xff]   ;;  %v2140_v44 = vld [vmem:[#allocation4 + $0x1c4] ss:$8 sps:$4 sm:$0xff]  }
 0x12c   :  { %1141 = vmatprep.subr.bf16.mxu1 %v2050_v45  ;;  %v2099_v45 = vld [vmem:[#allocation4 + $0x90] ss:$8 sps:$4 sm:$0xff]  }
 0x12e   :  { %1101 = vmatpush2.bf16.msra.mxu0 %v2045_v47  ;;  %v2138_v47 = vld [vmem:[#allocation4 + $0x1c0] ss:$8 sps:$4 sm:$0xff]  }
 0x12f   :  { %1102 = vmatprep.subr.bf16.mxu0 %v2053_v48  ;;  %1142 = vmatpush2.bf16.msra.mxu1 %v2048_v49  ;;  %v2104_v48 = vld [vmem:[#allocation4 + $0x84] ss:$8 sps:$4 sm:$0xff]   ;;  %v2143_v49 = vld [vmem:[#allocation4 + $0x1b4] ss:$8 sps:$4 sm:$0xff]  }
 0x130   :  { %1143 = vmatprep.subr.bf16.mxu1 %v2056_v50  ;;  %v2102_v50 = vld [vmem:[#allocation4 + $0x80] ss:$8 sps:$4 sm:$0xff]  }
 0x132   :  { %1103 = vmatpush2.bf16.msra.mxu0 %v2051_v52  ;;  %v2141_v52 = vld [vmem:[#allocation4 + $0x1b0] ss:$8 sps:$4 sm:$0xff]  }
 0x133   :  { %1557 = vmatprep.subr.bf16.mxu0 %v2059_v53  ;;  %1144 = vmatpush2.bf16.msra.mxu1 %v2054_v54  ;;  %v2146_v53 = vld [vmem:[#allocation4 + $0x1a4] ss:$8 sps:$4 sm:$0xff]   ;;  %v2144_v54 = vld [vmem:[#allocation4 + $0x1a0] ss:$8 sps:$4 sm:$0xff]  }
 0x134   :  { %1598 = vmatprep.subr.bf16.mxu1 %v2107_v63 }
 0x135   :  { %1105 = vmatmul.mubr.bf16.vlgmr.msra.gmra.mxu0 %v2271_v46  ;;  %v2069_v46 = vld [vmem:[#allocation4 + $0x30] ss:$8 sps:$4 sm:$0xff]  }
 0x136   :  { %1558 = vmatpush1.bf16.msra.mxu0 %v2057_v55  ;;  %1146 = vmatmul.mubr.bf16.vlgmr.msra.gmra.mxu1 %v2273_v51  ;;  %v2074_v51 = vld [vmem:[#allocation4 + $0x24] ss:$8 sps:$4 sm:$0xff]   ;;  %v2149_v55 = vld [vmem:[#allocation4 + $0x194] ss:$8 sps:$4 sm:$0xff]  }
 0x137   :  { %1559 = vmatprep.subr.bf16.mxu0 %v2062_v56  ;;  %1599 = vmatpush1.bf16.msra.mxu1 %v2105_v0  ;;  %v2147_v56 = vld [vmem:[#allocation4 + $0x190] ss:$8 sps:$4 sm:$0xff]  }
 0x138   :  { %1600 = vmatprep.subr.bf16.mxu1 %v2110_v1 }
 0x13a   :  { %1560 = vmatpush1.bf16.msra.mxu0 %v2060_v57  ;;  %v2152_v57 = vld [vmem:[#allocation4 + $0x184] ss:$8 sps:$4 sm:$0xff]  }
 0x13b   :  { %1561 = vmatprep.subr.bf16.mxu0 %v2065_v58  ;;  %1601 = vmatpush1.bf16.msra.mxu1 %v2108_v2  ;;  %v2150_v58 = vld [vmem:[#allocation4 + $0x180] ss:$8 sps:$4 sm:$0xff]  }
 0x13c   :  { %1602 = vmatprep.subr.bf16.mxu1 %v2113_v3 }
 0x13e   :  { %1562 = vmatpush1.bf16.msra.mxu0 %v2063_v59  ;;  %v50_v59 = vld [vmem:[%s2300_s4 + $0x4] sm:$0xf] }
 0x13f   :  { %1563 = vmatprep.subr.bf16.mxu0 %v2068_v60  ;;  %1603 = vmatpush1.bf16.msra.mxu1 %v2111_v6  ;;  %v333_v60 = vrot.slane %v50_v59, %v2255_v20 }
 0x140   :  { %1604 = vmatprep.subr.bf16.mxu1 %v2116_v8 }
 0x142   :  { %1564 = vmatpush1.bf16.msra.mxu0 %v2066_v61  ;;  %v337_v61 = vrot.slane %v50_v59, %v2261_v22 }
 0x143   :  { %1565 = vmatprep.subr.bf16.mxu0 %v2071_v62  ;;  %1605 = vmatpush1.bf16.msra.mxu1 %v2114_v10 }
 0x144   :  { %1606 = vmatprep.subr.bf16.mxu1 %v2119_v12 }
 0x146   :  { %1566 = vmatpush1.bf16.msra.mxu0 %v2069_v46 }
 0x147   :  { %1567 = vmatprep.subr.bf16.mxu0 %v2074_v51  ;;  %1607 = vmatpush1.bf16.msra.mxu1 %v2117_v14  ;;  %v345_v14 = vrot.slane %v50_v59, %v70_v25 }
 0x148   :  { %1608 = vmatprep.subr.bf16.mxu1 %v2122_v16 }
 0x14a   :  { %1568 = vmatpush1.bf16.msra.mxu0 %v2072_v5 }
 0x14b   :  { %1569 = vmatprep.subr.bf16.mxu0 %v2077_v7  ;;  %1609 = vmatpush1.bf16.msra.mxu1 %v2120_v18 }
 0x14c   :  { %1610 = vmatprep.subr.bf16.mxu1 %v2125_v21 }
 0x14e   :  { %1570 = vmatpush1.bf16.msra.mxu0 %v2075_v9 }
 0x14f   :  { %1571 = vmatprep.subr.bf16.mxu0 %v2080_v11  ;;  %1611 = vmatpush1.bf16.msra.mxu1 %v2123_v26 }
 0x150   :  { %1612 = vmatprep.subr.bf16.mxu1 %v2128_v28 }
 0x152   :  { %1572 = vmatpush1.bf16.msra.mxu0 %v2078_v13  ;;  %v341_v13 = vrot.slane %v50_v59, %v66_v23 }
 0x153   :  { %1573 = vmatprep.subr.bf16.mxu0 %v2083_v15  ;;  %1613 = vmatpush1.bf16.msra.mxu1 %v2126_v30 }
 0x154   :  { %1614 = vmatprep.subr.bf16.mxu1 %v2131_v32 }
 0x156   :  { %1574 = vmatpush2.bf16.msra.mxu0 %v2081_v17 }
 0x157   :  { %1575 = vmatprep.subr.bf16.mxu0 %v2086_v19  ;;  %1615 = vmatpush2.bf16.msra.mxu1 %v2129_v34 }
 0x158   :  { %1616 = vmatprep.subr.bf16.mxu1 %v2134_v36  ;;  %v51_v36 = vld [vmem:[%s2300_s4 + $0x8] sm:$0x3] }
 0x15a   :  { %1576 = vmatpush2.bf16.msra.mxu0 %v2084_v24 }
 0x15b   :  { %1577 = vmatprep.subr.bf16.mxu0 %v2089_v27  ;;  %1617 = vmatpush2.bf16.msra.mxu1 %v2132_v38 }
 0x15c   :  { %1618 = vmatprep.subr.bf16.mxu1 %v2137_v40 }
 0x15e   :  { %1578 = vmatpush2.bf16.msra.mxu0 %v2087_v29 }
 0x15f   :  { %1579 = vmatprep.subr.bf16.mxu0 %v2092_v31  ;;  %1619 = vmatpush2.bf16.msra.mxu1 %v2135_v42 }
 0x160   :  { %1620 = vmatprep.subr.bf16.mxu1 %v2140_v44 }
 0x162   :  { %1580 = vmatpush2.bf16.msra.mxu0 %v2090_v33 }
 0x163   :  { %1581 = vmatprep.subr.bf16.mxu0 %v2095_v35  ;;  %1621 = vmatpush2.bf16.msra.mxu1 %v2138_v47 }
 0x164   :  { %1622 = vmatprep.subr.bf16.mxu1 %v2143_v49 }
 0x166   :  { %1582 = vmatpush2.bf16.msra.mxu0 %v2093_v37  ;;  %v1234_v37 = vrot.slane %v51_v36, %v2261_v22 }
 0x167   :  { %1583 = vmatprep.subr.bf16.mxu0 %v2098_v39  ;;  %1623 = vmatpush2.bf16.msra.mxu1 %v2141_v52 }
 0x168   :  { %1624 = vmatprep.subr.bf16.mxu1 %v2146_v53 }
 0x16a   :  { %1584 = vmatpush2.bf16.msra.mxu0 %v2096_v41 }
 0x16b   :  { %1585 = vmatprep.subr.bf16.mxu0 %v2101_v43  ;;  %1625 = vmatpush2.bf16.msra.mxu1 %v2144_v54 }
 0x16c   :  { %1626 = vmatprep.subr.bf16.mxu1 %v2149_v55 }
 0x16e   :  { %1586 = vmatpush2.bf16.msra.mxu0 %v2099_v45  ;;  %v1230_v45 = vrot.slane %v51_v36, %v2255_v20 }
 0x16f   :  { %1587 = vmatprep.subr.bf16.mxu0 %v2104_v48  ;;  %1627 = vmatpush2.bf16.msra.mxu1 %v2147_v56 }
 0x170   :  { %1628 = vmatprep.subr.bf16.mxu1 %v2152_v57 }
 0x172   :  { %1588 = vmatpush2.bf16.msra.mxu0 %v2102_v50 }
 0x173   :  { %1629 = vmatpush2.bf16.msra.mxu1 %v2150_v58 }
 0x1b5   :  { %v1024_v62 = vpop.f32.mrf.mxu0  ;;  %v1065_v1 = vpop.f32.mrf.mxu1 }
 0x1b6   :  { %v1025_v63 = vadd.f32 %v1024_v62, %v333_v60 }
 0x1b7   :  { %v1026_v0 = vpop.f32.mrf.mxu0  ;;  %v1067_v3 = vpop.f32.mrf.mxu1 }
 0x1b8   :  { %v1027_v46 = vadd.f32 %v1026_v0, %v337_v61  ;;  %v1066_v2 = vadd.f32 %v1065_v1, %v1025_v63 }
 0x1b9   :  { %v1028_v51 = vpop.f32.mrf.mxu0  ;;  %v1069_v8 = vpop.f32.mrf.mxu1 }
 0x1ba   :  { %v1068_v5 = vadd.f32 %v1067_v3, %v1027_v46  ;;  %v1154_v6 = vmax.f32 %v1066_v2, 0.0 }
 0x1bb   :  { %v1029_v7 = vpop.f32.mrf.mxu0  ;;  %v1070_v10 = vpop.f32.mrf.mxu1 }
 0x1bc   :  { %v1155_v9 = vmax.f32 %v1068_v5, 0.0  ;;  %v1158_v12 = vpack.c.bf16 %v1154_v6, %v1154_v6 }
 0x1be   :  { %v1159_v11 = vpack.c.bf16 %v1155_v9, %v1155_v9 }
 0x1c0   :  { %1589 = vmatprep.mubr.bf16.mxu0 %v1159_v11 }
 0x1c1   :  { %1590 = vmatmul.mubr.bf16.vlgmr.msra.gmra.mxu0 %v1158_v12 }
 0x1f5   :  { %v1106_v15 = vpop.f32.mrf.mxu0 }
 0x1f6   :  { %v1107_v16 = vadd.f32 %v1106_v15, %v341_v13  ;;  %v1147_v18 = vpop.f32.mrf.mxu1 }
 0x1f7   :  { %v1108_v17 = vpop.f32.mrf.mxu0 }
 0x1f8   :  { %v1109_v19 = vadd.f32 %v1108_v17, %v345_v14  ;;  %v1148_v21 = vadd.f32 %v1147_v18, %v1107_v16  ;;  %v1149_v26 = vpop.f32.mrf.mxu1 }
 0x1f9   :  { %v1110_v24 = vpop.f32.mrf.mxu0 }
 0x1fa   :  { %v1150_v27 = vadd.f32 %v1149_v26, %v1109_v19  ;;  %v1156_v28 = vmax.f32 %v1148_v21, 0.0  ;;  %v1151_v30 = vpop.f32.mrf.mxu1 }
 0x1fb   :  { %v1111_v29 = vpop.f32.mrf.mxu0 }
 0x1fc   :  { %v1157_v31 = vmax.f32 %v1150_v27, 0.0  ;;  %v1152_v32 = vpop.f32.mrf.mxu1  ;;  %v1160_v34 = vpack.c.bf16 %v1156_v28, %v1156_v28 }
 0x1fe   :  { %v1161_v33 = vpack.c.bf16 %v1157_v31, %v1157_v31 }
 0x200   :  { %1630 = vmatprep.mubr.bf16.mxu1 %v1161_v33 }
 0x201   :  { %1631 = vmatmul.mubr.bf16.vlgmr.msra.gmra.mxu1 %v1160_v34 }
 0x281   :  { %v1591_v4 = vpop.f32.mrf.mxu0 }
 0x282   :  { %v1592_v47 = vadd.f32 %v1591_v4, %v1230_v45 }
 0x283   :  { %v1593_v23 = vpop.f32.mrf.mxu0 }
 0x284   :  { %v1594_v39 = vadd.f32 %v1593_v23, %v1234_v37 }
 0x285   :  { %v1595_v25 = vpop.f32.mrf.mxu0 }
 0x287   :  { %v1596_v35 = vpop.f32.mrf.mxu0 }
 0x2c1   :  { %v1632_v38 = vpop.f32.mrf.mxu1 }
 0x2c2   :  { %v1633_v48 = vadd.f32 %v1632_v38, %v1592_v47 }
 0x2c3   :  { %v1634_v40 = vpop.f32.mrf.mxu1 }
 0x2c4   :  { %v1635_v41 = vadd.f32 %v1634_v40, %v1594_v39 }
 0x2c5   :  { %v1636_v42 = vpop.f32.mrf.mxu1 }
 0x2c6   :  { %v1646_v43 = vsel %vm1645_vm2, %v1635_v41, 0.0 }
 0x2c7   :  { %v1637_v44 = vpop.f32.mrf.mxu1  ;;  %1647 = vadd.xlane.f32.xlu0 %v1646_v43 }
 0x2dd   :  { %1641 = vperm.xlu0 %1863, %v1633_v48  }
 0x350   :  { %v1648_v49 = vpop.xlane.xlu0 %1647 }
 0x351   :  { %v1650_v52 = vmul.f32 0.5, %v1648_v49 }
 0x358   :  { %v1642_v50 = vpop.permute.xlu0 %1641 }
 0x359   :  { %v1644_v53 = vadd.f32 %v1642_v50, %v1635_v41 }
 0x35b   :  { %v1651_v54 = vsub.f32 %v1644_v53, %v1650_v52 }
 0x35d   :  { %1652 = vst.msk [vmem:[%s2301_s5] sm:$0xff] %vm1645_vm2, %v1651_v54 }
 0x35e   :  { %1657 = vsyncpa [#allocation3], 1 }
 0x35f   :  { %1658 = vsyncpa [#allocation5], 1 }

</bundles_post_ra>
